<compile_context>
chip_gen: v7x
topology: tpu7x:2x2x1
jax: 0.10.0
libtpu: 0.0.40
codegen_flags: <defaults>
</compile_context>

<pallas_src>
import jax
import jax.numpy as jnp
from jax.experimental import pallas as pl
from jax.experimental.pallas import tpu as pltpu

# ----------------------------- problem sizes --------------------------------
N = 2          # batch
C = 4          # channels        (x_shape = (C, H, W))
H = 16
W = 16
HW = H * W
HID = 32       # hidden width of the synthetic inner model
SIGMA_DATA = 0.5
USE_KARRAS_C_NOISE = False   # module default path: c_noise = sigma
# label_dim = 0, self_condition = False  -> no extra model kwargs.
# TODO(synk): the PyTorch module wraps an arbitrary `model`; here it is a fixed
# synthetic per-pixel MLP so the whole forward can be fused into one kernel.


def karras_precond_kernel(sigma_ref,     # SMEM (N,)
                          x_ref,         # VMEM (N*C, HW)   NCHW-flattened
                          slab_ref,      # VMEM (HID+C, HID+1) packed params
                          out_ref,       # VMEM (N*C, HW)
                          w1b_ref,       # VMEM scratch (N*HID, N*C) block-diag W1
                          w2b_ref,       # VMEM scratch (N*C, N*HID) block-diag W2
                          aux_ref):      # VMEM scratch (N*HID, 4): bias1|bias2|c_skip
    sd = jnp.float32(SIGMA_DATA)
    n_batch = sigma_ref.shape[0]
    nc, _ = x_ref.shape
    c = nc // n_batch
    hid = slab_ref.shape[1] - 1

    # ---- unpack the tiny parameter slab (static slices, stays in vregs) ----
    w1t = slab_ref[0:hid, 0:c]                    # (HID, C)   = w1.T
    b1t = slab_ref[0:hid, c:c + 1]                # (HID, 1)
    wembt = slab_ref[0:hid, c + 1:c + 2]          # (HID, 1)
    bembt = slab_ref[0:hid, c + 2:c + 3]          # (HID, 1)
    w2t = slab_ref[hid:hid + c, 0:hid]            # (C, HID)   = w2.T
    b2t = slab_ref[hid:hid + c, hid:hid + 1]      # (C, 1)

    # ---- build block-diagonal weights with per-sample c_in / c_out folded ---
    w1b_ref[...] = jnp.zeros_like(w1b_ref)        # zero off-diagonal blocks
    w2b_ref[...] = jnp.zeros_like(w2b_ref)

    for n in range(n_batch):                      # static unroll (N = 2)
        sig = sigma_ref[n]
        denom = sig * sig + sd * sd
        c_skip = (sd * sd) / denom
        c_out = sig * sd * jax.lax.rsqrt(denom)
        c_in = jax.lax.rsqrt(denom)
        # c_noise = log(sigma)/4 if use_karras_c_noise else sigma (static branch)
        c_noise = jnp.log(sig) / 4.0 if USE_KARRAS_C_NOISE else sig

        w1b_ref[n * hid:(n + 1) * hid, n * c:(n + 1) * c] = c_in * w1t
        w2b_ref[n * c:(n + 1) * c, n * hid:(n + 1) * hid] = c_out * w2t
        # bias1 = b1 + noise-embedding, per sample
        aux_ref[n * hid:(n + 1) * hid, 0:1] = b1t + c_noise * wembt + bembt
        # bias2 = c_out * b2, per sample/channel
        aux_ref[n * c:(n + 1) * c, 1:2] = c_out * b2t
        # per-row c_skip for the residual mix
        aux_ref[n * c:(n + 1) * c, 2:3] = jnp.full((c, 1), c_skip, jnp.float32)

    # ---- batched inner model F(c_in * x, c_noise): one dot per layer --------
    x = x_ref[...]                                                  # (N*C, HW)
    h = jnp.dot(w1b_ref[...], x, preferred_element_type=jnp.float32)  # (N*HID, HW)
    h = h + aux_ref[:, 0:1]                                         # bias + emb
    h = h * jax.nn.sigmoid(h)                                       # SiLU
    f = jnp.dot(w2b_ref[...], h, preferred_element_type=jnp.float32)  # (N*C, HW)

    # ---- Karras preconditioning mix: full-sublane FMA + one unmasked store --
    out_ref[...] = aux_ref[0:nc, 2:3] * x + f + aux_ref[0:nc, 1:2]


@jax.jit
def karras_precond(x_nchw, sigma, slab):
    """x_nchw: (N, C, H, W) f32, sigma: (N,) f32, slab: packed params
    -> D_x (N, C, H, W) f32."""
    n, c, h, w = x_nchw.shape
    hw = h * w
    hid = slab.shape[1] - 1

    # NCHW -> (N*C, HW): free contiguous reshape, HW rides the lane axis,
    # N*C = 8 fills the sublanes.
    x_flat = x_nchw.reshape(n * c, hw)
    sigma1d = sigma.reshape(n).astype(jnp.float32)

    out_flat = pl.pallas_call(
        karras_precond_kernel,
        out_shape=jax.ShapeDtypeStruct((n * c, hw), jnp.float32),
        in_specs=[
            pl.BlockSpec(memory_space=pltpu.SMEM),   # sigma (scalars)
            pl.BlockSpec(memory_space=pltpu.VMEM),   # x
            pl.BlockSpec(memory_space=pltpu.VMEM),   # packed params slab
        ],
        out_specs=pl.BlockSpec(memory_space=pltpu.VMEM),
        scratch_shapes=[
            pltpu.VMEM((n * hid, n * c), jnp.float32),   # block-diag W1
            pltpu.VMEM((n * c, n * hid), jnp.float32),   # block-diag W2
            pltpu.VMEM((n * hid, 4), jnp.float32),       # bias1 | bias2 | c_skip
        ],
    )(sigma1d, x_flat, slab)

    # (N*C, HW) -> NCHW: free reshape (same memory layout).
    return out_flat.reshape(n, c, h, w)


def pack_params(params):
    """Pack all tiny model params into one (HID+C, HID+1) f32 slab.
    Done ONCE, outside the per-call path (pre-transposed for the kernel)."""
    w1, b1, wemb, bemb, w2, b2 = params          # torch-style layouts
    c, hid = w1.shape
    slab = jnp.zeros((hid + c, hid + 1), jnp.float32)
    slab = slab.at[:hid, :c].set(jnp.transpose(w1))      # (HID, C)
    slab = slab.at[:hid, c].set(b1[0])                   # (HID,)
    slab = slab.at[:hid, c + 1].set(wemb[0])             # (HID,)
    slab = slab.at[:hid, c + 2].set(bemb[0])             # (HID,)
    slab = slab.at[hid:, :hid].set(jnp.transpose(w2))    # (C, HID)
    slab = slab.at[hid:, hid].set(b2[0])                 # (C,)
    return slab


def karras_precond_ref(x_nchw, sigma, params):
    """Pure-JAX reference mirroring the PyTorch forward semantics exactly."""
    w1, b1, wemb, bemb, w2, b2 = params
    sd = jnp.float32(SIGMA_DATA)
    sig = sigma.reshape(-1, 1, 1, 1).astype(jnp.float32)     # (N,1,1,1) like torch
    c_skip = sd**2 / (sig**2 + sd**2)
    c_out = sig * sd / jnp.sqrt(sig**2 + sd**2)
    c_in = 1.0 / jnp.sqrt(sd**2 + sig**2)
    c_noise = jnp.log(sig) / 4.0 if USE_KARRAS_C_NOISE else sig

    x_in = c_in * x_nchw                                     # NCHW
    x_tok = jnp.transpose(x_in, (0, 2, 3, 1))                # NHWC
    emb = c_noise.reshape(-1, 1) * wemb + bemb               # (N, HID)
    h = jnp.einsum('nhwc,cd->nhwd', x_tok, w1) + b1 + emb[:, None, None, :]
    h = h * jax.nn.sigmoid(h)
    f_tok = jnp.einsum('nhwd,dc->nhwc', h, w2) + b2
    f_x = jnp.transpose(f_tok, (0, 3, 1, 2))                 # NCHW
    return c_skip * x_nchw + c_out * f_x


def make_params(key):
    k1, k2, k3, k4 = jax.random.split(key, 4)
    w1 = jax.random.normal(k1, (C, HID), jnp.float32) * (1.0 / jnp.sqrt(C))
    b1 = jnp.zeros((1, HID), jnp.float32)
    wemb = jax.random.normal(k2, (1, HID), jnp.float32) * 0.1
    bemb = jax.random.normal(k3, (1, HID), jnp.float32) * 0.1
    w2 = jax.random.normal(k4, (HID, C), jnp.float32) * (1.0 / jnp.sqrt(HID))
    b2 = jnp.zeros((1, C), jnp.float32)
    return (w1, b1, wemb, bemb, w2, b2)


if __name__ == "__main__":
    key = jax.random.PRNGKey(0)
    kx, ks, kp = jax.random.split(key, 3)

    x_noisy = jax.random.normal(kx, (N, C, H, W), jnp.float32)     # NCHW like torch
    sigma = jnp.exp(jax.random.normal(ks, (N,), jnp.float32))      # positive noise levels
    params = make_params(kp)
    slab = pack_params(params)          # one-time packing, outside per-call path

    d_x = karras_precond(x_noisy, sigma, slab)
    d_x = jax.block_until_ready(d_x)

    d_ref = karras_precond_ref(x_noisy, sigma, params)
    assert d_x.shape == (N, C, H, W)
    assert jnp.allclose(d_x, d_ref, rtol=1e-3, atol=1e-3), "mismatch vs reference"

    print("KERNEL_OK")
</pallas_src>

<mosaic_0001>
module attributes {stable_mosaic.version = 11 : i64} {
  func.func @karras_precond_kernel(%arg0: memref<2xf32, #tpu.memory_space<smem>>, %arg1: memref<8x256xf32, #tpu.memory_space<vmem>>, %arg2: memref<36x33xf32, #tpu.memory_space<vmem>>, %arg3: memref<8x256xf32, #tpu.memory_space<vmem>>, %arg4: memref<64x8xf32, #tpu.memory_space<vmem>>, %arg5: memref<8x64xf32, #tpu.memory_space<vmem>>, %arg6: memref<64x4xf32, #tpu.memory_space<vmem>>) attributes {dimension_semantics = [], scalar_prefetch = 0 : i64, scratch_operands = 3 : i64, tpu.core_type = #tpu.core_type<tc>} {
    %c0 = arith.constant 0 : index
    %c0_0 = arith.constant 0 : index
    %0 = vector.load %arg2[%c0, %c0_0] : memref<36x33xf32, #tpu.memory_space<vmem>>, vector<32x4xf32>
    %c0_1 = arith.constant 0 : index
    %c4 = arith.constant 4 : index
    %1 = vector.load %arg2[%c0_1, %c4] : memref<36x33xf32, #tpu.memory_space<vmem>>, vector<32x1xf32>
    %c0_2 = arith.constant 0 : index
    %c5 = arith.constant 5 : index
    %2 = vector.load %arg2[%c0_2, %c5] : memref<36x33xf32, #tpu.memory_space<vmem>>, vector<32x1xf32>
    %c0_3 = arith.constant 0 : index
    %c6 = arith.constant 6 : index
    %3 = vector.load %arg2[%c0_3, %c6] : memref<36x33xf32, #tpu.memory_space<vmem>>, vector<32x1xf32>
    %c32 = arith.constant 32 : index
    %c0_4 = arith.constant 0 : index
    %4 = vector.load %arg2[%c32, %c0_4] : memref<36x33xf32, #tpu.memory_space<vmem>>, vector<4x32xf32>
    %c32_5 = arith.constant 32 : index
    %c32_6 = arith.constant 32 : index
    %5 = vector.load %arg2[%c32_5, %c32_6] : memref<36x33xf32, #tpu.memory_space<vmem>>, vector<4x1xf32>
    %cst = arith.constant 0.000000e+00 : f32
    %6 = vector.broadcast %cst : f32 to vector<64x8xf32>
    %c0_7 = arith.constant 0 : index
    %c0_8 = arith.constant 0 : index
    %7 = vector.load %arg4[%c0_7, %c0_8] : memref<64x8xf32, #tpu.memory_space<vmem>>, vector<64x8xf32>
    tpu.vector_store %arg4[%c0_7, %c0_8], %6 {strides = array<i32>} : memref<64x8xf32, #tpu.memory_space<vmem>>, vector<64x8xf32>,
    %cst_9 = arith.constant 0.000000e+00 : f32
    %8 = vector.broadcast %cst_9 : f32 to vector<8x64xf32>
    %c0_10 = arith.constant 0 : index
    %c0_11 = arith.constant 0 : index
    %9 = vector.load %arg5[%c0_10, %c0_11] : memref<8x64xf32, #tpu.memory_space<vmem>>, vector<8x64xf32>
    tpu.vector_store %arg5[%c0_10, %c0_11], %8 {strides = array<i32>} : memref<8x64xf32, #tpu.memory_space<vmem>>, vector<8x64xf32>,
    %c0_12 = arith.constant 0 : index
    %10 = memref.load %arg0[%c0_12] : memref<2xf32, #tpu.memory_space<smem>>
    %11 = arith.mulf %10, %10 : f32
    %cst_13 = arith.constant 5.000000e-01 : f32
    %cst_14 = arith.constant 5.000000e-01 : f32
    %12 = arith.mulf %cst_13, %cst_14 : f32
    %13 = arith.addf %11, %12 : f32
    %cst_15 = arith.constant 5.000000e-01 : f32
    %cst_16 = arith.constant 5.000000e-01 : f32
    %14 = arith.mulf %cst_15, %cst_16 : f32
    %15 = arith.divf %14, %13 : f32
    %cst_17 = arith.constant 5.000000e-01 : f32
    %16 = arith.mulf %10, %cst_17 : f32
    %17 = math.rsqrt %13 : f32
    %18 = arith.mulf %16, %17 : f32
    %19 = math.rsqrt %13 : f32
    %20 = vector.broadcast %19 : f32 to vector<32x4xf32>
    %21 = arith.mulf %20, %0 : vector<32x4xf32>
    %c0_18 = arith.constant 0 : index
    %c0_19 = arith.constant 0 : index
    %22 = vector.load %arg4[%c0_18, %c0_19] : memref<64x8xf32, #tpu.memory_space<vmem>>, vector<32x4xf32>
    tpu.vector_store %arg4[%c0_18, %c0_19], %21 {strides = array<i32>} : memref<64x8xf32, #tpu.memory_space<vmem>>, vector<32x4xf32>,
    %23 = vector.broadcast %18 : f32 to vector<4x32xf32>
    %24 = arith.mulf %23, %4 : vector<4x32xf32>
    %c0_20 = arith.constant 0 : index
    %c0_21 = arith.constant 0 : index
    %25 = vector.load %arg5[%c0_20, %c0_21] : memref<8x64xf32, #tpu.memory_space<vmem>>, vector<4x32xf32>
    tpu.vector_store %arg5[%c0_20, %c0_21], %24 {strides = array<i32>} : memref<8x64xf32, #tpu.memory_space<vmem>>, vector<4x32xf32>,
    %26 = vector.broadcast %10 : f32 to vector<32x1xf32>
    %27 = arith.mulf %26, %2 : vector<32x1xf32>
    %28 = arith.addf %1, %27 : vector<32x1xf32>
    %29 = arith.addf %28, %3 : vector<32x1xf32>
    %c0_22 = arith.constant 0 : index
    %c0_23 = arith.constant 0 : index
    %30 = vector.load %arg6[%c0_22, %c0_23] : memref<64x4xf32, #tpu.memory_space<vmem>>, vector<32x1xf32>
    tpu.vector_store %arg6[%c0_22, %c0_23], %29 {strides = array<i32>} : memref<64x4xf32, #tpu.memory_space<vmem>>, vector<32x1xf32>,
    %31 = vector.broadcast %18 : f32 to vector<4x1xf32>
    %32 = arith.mulf %31, %5 : vector<4x1xf32>
    %c0_24 = arith.constant 0 : index
    %c1 = arith.constant 1 : index
    %33 = vector.load %arg6[%c0_24, %c1] : memref<64x4xf32, #tpu.memory_space<vmem>>, vector<4x1xf32>
    tpu.vector_store %arg6[%c0_24, %c1], %32 {strides = array<i32>} : memref<64x4xf32, #tpu.memory_space<vmem>>, vector<4x1xf32>,
    %34 = vector.broadcast %15 : f32 to vector<4x1xf32>
    %c0_25 = arith.constant 0 : index
    %c2 = arith.constant 2 : index
    %35 = vector.load %arg6[%c0_25, %c2] : memref<64x4xf32, #tpu.memory_space<vmem>>, vector<4x1xf32>
    tpu.vector_store %arg6[%c0_25, %c2], %34 {strides = array<i32>} : memref<64x4xf32, #tpu.memory_space<vmem>>, vector<4x1xf32>,
    %c1_26 = arith.constant 1 : index
    %36 = memref.load %arg0[%c1_26] : memref<2xf32, #tpu.memory_space<smem>>
    %37 = arith.mulf %36, %36 : f32
    %cst_27 = arith.constant 5.000000e-01 : f32
    %cst_28 = arith.constant 5.000000e-01 : f32
    %38 = arith.mulf %cst_27, %cst_28 : f32
    %39 = arith.addf %37, %38 : f32
    %cst_29 = arith.constant 5.000000e-01 : f32
    %cst_30 = arith.constant 5.000000e-01 : f32
    %40 = arith.mulf %cst_29, %cst_30 : f32
    %41 = arith.divf %40, %39 : f32
    %cst_31 = arith.constant 5.000000e-01 : f32
    %42 = arith.mulf %36, %cst_31 : f32
    %43 = math.rsqrt %39 : f32
    %44 = arith.mulf %42, %43 : f32
    %45 = math.rsqrt %39 : f32
    %46 = vector.broadcast %45 : f32 to vector<32x4xf32>
    %47 = arith.mulf %46, %0 : vector<32x4xf32>
    %c32_32 = arith.constant 32 : index
    %c4_33 = arith.constant 4 : index
    %48 = vector.load %arg4[%c32_32, %c4_33] : memref<64x8xf32, #tpu.memory_space<vmem>>, vector<32x4xf32>
    tpu.vector_store %arg4[%c32_32, %c4_33], %47 {strides = array<i32>} : memref<64x8xf32, #tpu.memory_space<vmem>>, vector<32x4xf32>,
    %49 = vector.broadcast %44 : f32 to vector<4x32xf32>
    %50 = arith.mulf %49, %4 : vector<4x32xf32>
    %c4_34 = arith.constant 4 : index
    %c32_35 = arith.constant 32 : index
    %51 = vector.load %arg5[%c4_34, %c32_35] : memref<8x64xf32, #tpu.memory_space<vmem>>, vector<4x32xf32>
    tpu.vector_store %arg5[%c4_34, %c32_35], %50 {strides = array<i32>} : memref<8x64xf32, #tpu.memory_space<vmem>>, vector<4x32xf32>,
    %52 = vector.broadcast %36 : f32 to vector<32x1xf32>
    %53 = arith.mulf %52, %2 : vector<32x1xf32>
    %54 = arith.addf %1, %53 : vector<32x1xf32>
    %55 = arith.addf %54, %3 : vector<32x1xf32>
    %c32_36 = arith.constant 32 : index
    %c0_37 = arith.constant 0 : index
    %56 = vector.load %arg6[%c32_36, %c0_37] : memref<64x4xf32, #tpu.memory_space<vmem>>, vector<32x1xf32>
    tpu.vector_store %arg6[%c32_36, %c0_37], %55 {strides = array<i32>} : memref<64x4xf32, #tpu.memory_space<vmem>>, vector<32x1xf32>,
    %57 = vector.broadcast %44 : f32 to vector<4x1xf32>
    %58 = arith.mulf %57, %5 : vector<4x1xf32>
    %c4_38 = arith.constant 4 : index
    %c1_39 = arith.constant 1 : index
    %59 = vector.load %arg6[%c4_38, %c1_39] : memref<64x4xf32, #tpu.memory_space<vmem>>, vector<4x1xf32>
    tpu.vector_store %arg6[%c4_38, %c1_39], %58 {strides = array<i32>} : memref<64x4xf32, #tpu.memory_space<vmem>>, vector<4x1xf32>,
    %60 = vector.broadcast %41 : f32 to vector<4x1xf32>
    %c4_40 = arith.constant 4 : index
    %c2_41 = arith.constant 2 : index
    %61 = vector.load %arg6[%c4_40, %c2_41] : memref<64x4xf32, #tpu.memory_space<vmem>>, vector<4x1xf32>
    tpu.vector_store %arg6[%c4_40, %c2_41], %60 {strides = array<i32>} : memref<64x4xf32, #tpu.memory_space<vmem>>, vector<4x1xf32>,
    %c0_42 = arith.constant 0 : index
    %c0_43 = arith.constant 0 : index
    %62 = vector.load %arg1[%c0_42, %c0_43] : memref<8x256xf32, #tpu.memory_space<vmem>>, vector<8x256xf32>
    %c0_44 = arith.constant 0 : index
    %c0_45 = arith.constant 0 : index
    %63 = vector.load %arg4[%c0_44, %c0_45] : memref<64x8xf32, #tpu.memory_space<vmem>>, vector<64x8xf32>
    %cst_46 = arith.constant dense<0.000000e+00> : vector<64x256xf32>
    %64 = tpu.matmul %63, %62, %cst_46 {dimension_numbers = #tpu.dot_dimension_numbers<[1], [0], [0], [1], [0, 0, 1, 1], [], []>} : vector<64x8xf32>, vector<8x256xf32>, vector<64x256xf32> -> vector<64x256xf32>
    %c0_47 = arith.constant 0 : index
    %c0_48 = arith.constant 0 : index
    %65 = vector.load %arg6[%c0_47, %c0_48] : memref<64x4xf32, #tpu.memory_space<vmem>>, vector<64x1xf32>
    %66 = vector.broadcast %65 : vector<64x1xf32> to vector<64x256xf32>
    %67 = arith.addf %64, %66 : vector<64x256xf32>
    %68 = arith.negf %67 : vector<64x256xf32>
    %69 = math.exp %68 : vector<64x256xf32>
    %cst_49 = arith.constant 1.000000e+00 : f32
    %70 = vector.broadcast %cst_49 : f32 to vector<64x256xf32>
    %71 = arith.addf %70, %69 : vector<64x256xf32>
    %72 = arith.divf %70, %71 : vector<64x256xf32>
    %73 = arith.mulf %67, %72 : vector<64x256xf32>
    %c0_50 = arith.constant 0 : index
    %c0_51 = arith.constant 0 : index
    %74 = vector.load %arg5[%c0_50, %c0_51] : memref<8x64xf32, #tpu.memory_space<vmem>>, vector<8x64xf32>
    %cst_52 = arith.constant dense<0.000000e+00> : vector<8x256xf32>
    %75 = tpu.matmul %74, %73, %cst_52 {dimension_numbers = #tpu.dot_dimension_numbers<[1], [0], [0], [1], [0, 0, 1, 1], [], []>} : vector<8x64xf32>, vector<64x256xf32>, vector<8x256xf32> -> vector<8x256xf32>
    %c0_53 = arith.constant 0 : index
    %c2_54 = arith.constant 2 : index
    %76 = vector.load %arg6[%c0_53, %c2_54] : memref<64x4xf32, #tpu.memory_space<vmem>>, vector<8x1xf32>
    %77 = vector.broadcast %76 : vector<8x1xf32> to vector<8x256xf32>
    %78 = arith.mulf %77, %62 : vector<8x256xf32>
    %79 = arith.addf %78, %75 : vector<8x256xf32>
    %c0_55 = arith.constant 0 : index
    %c1_56 = arith.constant 1 : index
    %80 = vector.load %arg6[%c0_55, %c1_56] : memref<64x4xf32, #tpu.memory_space<vmem>>, vector<8x1xf32>
    %81 = vector.broadcast %80 : vector<8x1xf32> to vector<8x256xf32>
    %82 = arith.addf %79, %81 : vector<8x256xf32>
    %c0_57 = arith.constant 0 : index
    %c0_58 = arith.constant 0 : index
    %83 = vector.load %arg3[%c0_57, %c0_58] : memref<8x256xf32, #tpu.memory_space<vmem>>, vector<8x256xf32>
    tpu.vector_store %arg3[%c0_57, %c0_58], %82 {strides = array<i32>} : memref<8x256xf32, #tpu.memory_space<vmem>>, vector<8x256xf32>,
    return
  }
}

</mosaic_0001>

<bundles_post_ra>
// kernel: karras_precond.1
= control target key start
LH: loop header
LB: loop body
LE: loop exit
PB: predicated region body
PF: predicated region fallthrough
CT: control target
= control target key end

     0   :  { %8 = vsyncpa [#allocation6], 0  ;;  %s1081_s0 = inlined_call_operand.vmem [shape: f32[2], index: 0, kind: input, shape index: {}]   ;;  %s1082_s1 = inlined_call_operand.vmem [shape: f32[8,256], index: 1, kind: input, shape index: {}]   ;;  %s1083_s2 = inlined_call_operand.vmem [shape: f32[36,33], index: 2, kind: input, shape index: {}]   ;;  %s1084_s3 = inlined_call_operand.vmem [shape: f32[8,256], index: 3, kind: output, shape index: {}]  }
   0x1   :  { %s15_s14 = sshll.u32 %s1081_s0, 4  ;;  %s16_s14 = int_to_ptr.vmem [resolvable:$true] %s15_s14 }
   0x2   :  { %s788_s15 = scalar_lea.vmem %s16_s14, 16  ;;  %p793_p1 = scmp.lt.s32.totalorder %s16_s14, %s16_s14 }
   0x3   :  { %p789_p0 = scmp.ne.s32.totalorder %s16_s14, %s788_s15  ;;  %p794_p2 = scmp.lt.s32.totalorder %s788_s15, %s788_s15 }
   0x5   :  { %p795_p3 = por %p794_p2, %p793_p1 }
   0x7   :  { %p796_p4 = pnand %p795_p3, %p789_p0 }
   0x9   :  { %799 = shalt.err (!%p796_p4)
}
   0xa   :  { %s802_s16 = smov [#allocation5]  }
   0xb   :  { %18 = dma.vmem_to_smem %s16_s14, 16, %s802_s16, [#allocation6]  }
   0xc   :  { %800 = dma.done.wait [#allocation6], 16  }
   0xd   :  { %801 = vsyncadd [#allocation6], 4294967280 }
   0xe   :  { %26 = sfence }
   0xf   :  { %s836_s17 = sld [smem:[#allocation5]]  ;;  %s838_s18 = sld [smem:[#allocation5 + $0x1]]  ;;  %vm32_vm0 = vcmask 64512   ;;  %v803_v0 = vmov 0.0   ;;  %v859_v1 = vld [vmem:[%s1082_s1 + $0x8] sm:$0xff]  ;;  %v864_v2 = vld [vmem:[%s1082_s1] sm:$0xff] }
  0x10   :  { %33 = vst.msk [vmem:[#allocation2] sm:$0xff] %vm32_vm0, %v803_v0  ;;  %34 = vst.msk [vmem:[#allocation2 + $0x8] sm:$0xff] %vm32_vm0, %v803_v0  ;;  %391 = vmatprep.mubr.f32.mxu0 %v803_v0  ;;  %620 = vmatprep.mubr.f32.mxu1 %v803_v0  ;;  %vm41_vm1 = vcmask 523264   ;;  %v882_v9 = vld [vmem:[%s1083_s2] sm:$0xff]  ;;  %v887_v10 = vld [vmem:[%s1083_s2 + $0x8] sm:$0xff]  ;;  %vm60_vm2 = vcmask 31744  }
  0x11   :  { %35 = vst.msk [vmem:[#allocation2 + $0x10] sm:$0xff] %vm32_vm0, %v803_v0  ;;  %36 = vst.msk [vmem:[#allocation2 + $0x18] sm:$0xff] %vm32_vm0, %v803_v0  ;;  %327 = vmatprep.subr.mxu0 %v859_v1  ;;  %v892_v11 = vld [vmem:[%s1083_s2 + $0x10] sm:$0xff]  ;;  %v898_v12 = vld [vmem:[%s1083_s2 + $0x18] sm:$0xff]  ;;  %vm67_vm3 = vcmask 257024   ;;  %s805_s16 = smov 127  }
  0x12   :  { %37 = vst.msk [vmem:[#allocation2 + $0x20] sm:$0xff] %vm32_vm0, %v803_v0  ;;  %38 = vst.msk [vmem:[#allocation2 + $0x28] sm:$0xff] %vm32_vm0, %v803_v0  ;;  %328 = vmatpush1.msra.mxu0 %v864_v2  ;;  %v31_v17 = vld [vmem:[%s1083_s2 + $0x20] sm:$0xf]  ;;  %s804_s2 = smov 4   ;;  %vm177_vm4 = vcmask 64544  }
  0x13   :  { %39 = vst.msk [vmem:[#allocation2 + $0x30] sm:$0xff] %vm32_vm0, %v803_v0  ;;  %40 = vst.msk [vmem:[#allocation2 + $0x38] sm:$0xff] %vm32_vm0, %v803_v0  ;;  %v808_v49 = vmov 0   ;;  %s809_s0 = smov 124   ;;  %vm130_vm5 = vcmask 7168   ;;  %vm139_vm6 = vcmask 11272  }
  0x14   :  { %42 = vst.msk [vmem:[#allocation3] sm:$0xff] %vm41_vm1, %v803_v0  ;;  %711 = vset.pattern.permute.xlu1 %v808_v49  ;;  %712 = vset.pattern.permute.xlu0 %v808_v49  ;;  %vm142_vm7 = vcmask 19472   ;;  %s811_s21 = smov 32   ;;  %vm188_vm8 = vcmask 519424  }
  0x15   :  { %s44_s22 = smul.f32 %s836_s17, %s836_s17  ;;  %v69_v26 = vstv %s836_s17  ;;  %v190_v37 = vstv %s838_s18 }
  0x16   :  { %s145_s23 = smul.f32 %s838_s18, %s838_s18  ;;  %v71_v29 = vmul.f32 %v69_v26, %v887_v10  ;;  %v70_v30 = vmul.f32 %v69_v26, %v882_v9  ;;  %v73_v33 = vmul.f32 %v69_v26, %v898_v12  ;;  %v72_v34 = vmul.f32 %v69_v26, %v892_v11 }
  0x17   :  { %s45_s24 = sadd.f32 0.25, %s44_s22  ;;  %s50_s25 = smul.f32 0.5, %s836_s17  ;;  %v192_v38 = vmul.f32 %v190_v37, %v887_v10  ;;  %v191_v39 = vmul.f32 %v190_v37, %v882_v9  ;;  %v194_v40 = vmul.f32 %v190_v37, %v898_v12  ;;  %v193_v41 = vmul.f32 %v190_v37, %v892_v11 }
  0x18   :  { %s146_s1 = sadd.f32 0.25, %s145_s23  ;;  %s151_s6 = smul.f32 0.5, %s838_s18 }
  0x19   :  { %v46_v3 = vstv %s45_s24  ;;  %s806_s17 = smov 126   ;;  %s807_s18 = smov 97  }
  0x1a   :  { %716 = vrcp.f32 %v46_v3  ;;  %v147_v4 = vstv %s146_s1 }
  0x1b   :  { %718 = vrsqrt.f32 %v46_v3 }
  0x1c   :  { %720 = vrcp.f32 %v147_v4 }
  0x1d   :  { %722 = vrsqrt.f32 %v147_v4 }
  0x24   :  { %v717_v5 = vpop.eup %716 }
  0x25   :  { %v719_v6 = vpop.eup %718  ;;  %692 = vpush %v717_v5 }
  0x26   :  { %v721_v7 = vpop.eup %720  ;;  %694 = vpush %v719_v6 }
  0x27   :  { %v723_v8 = vpop.eup %722  ;;  %696 = vpush %v721_v7 }
  0x28   :  { %698 = vpush %v723_v8 }
  0x56   :  { %s877_s26 = spop %692 }
  0x57   :  { %s695_s9 = spop %694  ;;  %s49_s19 = smul.f32 0.25, %s877_s26 }
  0x58   :  { %s54_s10 = smul.f32 %s695_s9, %s50_s25  ;;  %v55_v13 = vstv %s695_s9  ;;  %s900_s11 = spop %696 }
  0x59   :  { %v56_v14 = vmul.f32 %v55_v13, %v882_v9  ;;  %v57_v15 = vmul.f32 %v55_v13, %v887_v10  ;;  %v58_v16 = vmul.f32 %v55_v13, %v892_v11  ;;  %s699_s14 = spop %698  ;;  %v59_v18 = vmul.f32 %v55_v13, %v898_v12  ;;  %s150_s20 = smul.f32 0.25, %s900_s11 }
  0x5a   :  { %v65_v19 = vstv %s54_s10  ;;  %s155_s15 = smul.f32 %s699_s14, %s151_s6  ;;  %v156_v20 = vstv %s699_s14 }
  0x5b   :  { %61 = vst.msk [vmem:[#allocation2] sm:$0xff] %vm60_vm2, %v56_v14  ;;  %62 = vst.msk [vmem:[#allocation2 + $0x8] sm:$0xff] %vm60_vm2, %v57_v15  ;;  %v159_v21 = vmul.f32 %v156_v20, %v892_v11  ;;  %v157_v22 = vmul.f32 %v156_v20, %v882_v9  ;;  %v66_v24 = vmul.f32 %v65_v19, %v31_v17 }
  0x5c   :  { %63 = vst.msk [vmem:[#allocation2 + $0x10] sm:$0xff] %vm60_vm2, %v58_v16  ;;  %64 = vst.msk [vmem:[#allocation2 + $0x18] sm:$0xff] %vm60_vm2, %v59_v18  ;;  %v182_v23 = vstv %s155_s15  ;;  %v160_v27 = vmul.f32 %v156_v20, %v898_v12  ;;  %v158_v28 = vmul.f32 %v156_v20, %v887_v10 }
  0x5d   :  { %v915_v25 = vmul.f32 %v182_v23, %v31_v17  ;;  %169 = vrot.lane.b32.xlu1 %v159_v21, %s804_s2  ;;  %165 = vrot.lane.b32.xlu0 %v157_v22, %s804_s2  ;;  %68 = vst.msk [vmem:[#allocation3] sm:$0xf] %vm67_vm3, %v66_v24 }
  0x61   :  { %171 = vrot.lane.b32.xlu1 %v160_v27, %s804_s2  ;;  %167 = vrot.lane.b32.xlu0 %v158_v28, %s804_s2 }
  0x62   :  { %v247_v31 = vld [vmem:[#allocation2] sm:$0xff]  ;;  %v248_v32 = vld [vmem:[#allocation2 + $0x8] sm:$0xff] }
  0x63   :  { %651 = vmatmul.mubr.msk.f32.vlgmr.msra.gmra.mrb[0].mxu0 %vm32_vm0, %v247_v31  ;;  %v249_v35 = vld [vmem:[#allocation2 + $0x10] sm:$0xff]  ;;  %v250_v36 = vld [vmem:[#allocation2 + $0x18] sm:$0xff]  ;;  %v243_v31 = vstv %s150_s20 }
  0x64   :  { %397 = vmatprep.mubr.f32.mxu0 %v803_v0 }
  0x65   :  { %80 = vrot.lane.b32.xlu1 %v71_v29, %s805_s16  ;;  %78 = vrot.lane.b32.xlu0 %v70_v30, %s805_s16  ;;  %v141_v29 = vstv %s49_s19 }
  0x67   :  { %652 = vmatmul.mubr.msk.f32.gmra.mrb[2].mxu0 %vm32_vm0, %v248_v32 }
  0x68   :  { %403 = vmatprep.mubr.f32.mxu0 %v803_v0 }
  0x69   :  { %100 = vrot.lane.b32.xlu1 %v887_v10, %s806_s17  ;;  %98 = vrot.lane.b32.xlu0 %v882_v9, %s806_s17 }
  0x6b   :  { %653 = vmatmul.mubr.msk.f32.gmra.mrb[4].mxu0 %vm32_vm0, %v249_v35 }
  0x6c   :  { %409 = vmatprep.mubr.f32.mxu0 %v803_v0 }
  0x6d   :  { %84 = vrot.lane.b32.xlu1 %v73_v33, %s805_s16  ;;  %82 = vrot.lane.b32.xlu0 %v72_v34, %s805_s16 }
  0x6f   :  { %654 = vmatmul.mubr.msk.f32.gmra.mrb[6].mxu0 %vm32_vm0, %v250_v36 }
  0x70   :  { %415 = vmatprep.mubr.f32.mxu0 %v803_v0 }
  0x71   :  { %104 = vrot.lane.b32.xlu1 %v898_v12, %s806_s17  ;;  %102 = vrot.lane.b32.xlu0 %v892_v11, %s806_s17 }
  0x75   :  { %201 = vrot.lane.b32.xlu1 %v192_v38, %s805_s16  ;;  %199 = vrot.lane.b32.xlu0 %v191_v39, %s805_s16 }
  0x79   :  { %205 = vrot.lane.b32.xlu1 %v194_v40, %s805_s16  ;;  %203 = vrot.lane.b32.xlu0 %v193_v41, %s805_s16 }
  0x7d   :  { %136 = vrot.lane.b32.xlu1 %v66_v24, %s807_s18 }
  0xcf   :  { %v170_v42 = vpop.permute.xlu1 %169  ;;  %v166_v43 = vpop.permute.xlu0 %165 }
  0xd0   :  { %180 = vst.msk [vmem:[#allocation2 + $0x30] sm:$0xff] %vm177_vm4, %v170_v42  ;;  %178 = vst.msk [vmem:[#allocation2 + $0x20] sm:$0xff] %vm177_vm4, %v166_v43 }
  0xd3   :  { %v172_v44 = vpop.permute.xlu1 %171  ;;  %v168_v45 = vpop.permute.xlu0 %167 }
  0xd4   :  { %181 = vst.msk [vmem:[#allocation2 + $0x38] sm:$0xff] %vm177_vm4, %v172_v44  ;;  %179 = vst.msk [vmem:[#allocation2 + $0x28] sm:$0xff] %vm177_vm4, %v168_v45 }
  0xd7   :  { %v81_v46 = vpop.permute.xlu1 %80  ;;  %v79_v47 = vpop.permute.xlu0 %78  ;;  %v251_v48 = vld [vmem:[#allocation2 + $0x20] sm:$0xff]  ;;  %v253_v59 = vld [vmem:[#allocation2 + $0x30] sm:$0xff] }
  0xd8   :  { %655 = vmatmul.mubr.msk.f32.gmra.mrb[8].mxu0 %vm32_vm0, %v251_v48  ;;  %v91_v50 = vadd.f32 %v81_v46, %v887_v10  ;;  %v90_v51 = vadd.f32 %v79_v47, %v882_v9  ;;  %v810_v46 = vmov 2   ;;  %v812_v47 = vmov 1  }
  0xd9   :  { %421 = vmatprep.mubr.f32.mxu0 %v803_v0 }
  0xdb   :  { %v101_v52 = vpop.permute.xlu1 %100  ;;  %v99_v53 = vpop.permute.xlu0 %98  ;;  %v252_v54 = vld [vmem:[#allocation2 + $0x28] sm:$0xff]  ;;  %v254_v3 = vld [vmem:[#allocation2 + $0x38] sm:$0xff] }
  0xdc   :  { %v111_v55 = vadd.f32 %v101_v52, %v91_v50  ;;  %v110_v56 = vadd.f32 %v99_v53, %v90_v51  ;;  %656 = vmatmul.mubr.msk.f32.gmra.mrb[10].mxu0 %vm32_vm0, %v252_v54 }
  0xdd   :  { %427 = vmatprep.mubr.f32.mxu0 %v803_v0 }
  0xde   :  { %120 = vrot.lane.b32.xlu1 %v111_v55, %s809_s0  ;;  %118 = vrot.lane.b32.xlu0 %v110_v56, %s809_s0 }
  0xdf   :  { %v85_v57 = vpop.permute.xlu1 %84  ;;  %v83_v58 = vpop.permute.xlu0 %82 }
  0xe0   :  { %657 = vmatmul.mubr.msk.f32.gmra.mrb[12].mxu0 %vm32_vm0, %v253_v59  ;;  %v93_v60 = vadd.f32 %v85_v57, %v898_v12  ;;  %v92_v61 = vadd.f32 %v83_v58, %v892_v11 }
  0xe1   :  { %433 = vmatprep.mubr.f32.mxu0 %v803_v0 }
  0xe2   :  { %239 = vrot.lane.b32.xlu0 %v915_v25, %s807_s18 }
  0xe3   :  { %v105_v62 = vpop.permute.xlu1 %104  ;;  %v103_v63 = vpop.permute.xlu0 %102 }
  0xe4   :  { %v113_v4 = vadd.f32 %v105_v62, %v93_v60  ;;  %v112_v5 = vadd.f32 %v103_v63, %v92_v61  ;;  %658 = vmatmul.mubr.msk.f32.gmra.mrb[14].mxu0 %vm32_vm0, %v254_v3 }
  0xe6   :  { %124 = vrot.lane.b32.xlu1 %v113_v4, %s809_s0  ;;  %122 = vrot.lane.b32.xlu0 %v112_v5, %s809_s0 }
  0xe7   :  { %v202_v6 = vpop.permute.xlu1 %201  ;;  %v200_v0 = vpop.permute.xlu0 %199 }
  0xe8   :  { %v212_v7 = vadd.f32 %v202_v6, %v887_v10  ;;  %v211_v8 = vadd.f32 %v200_v0, %v882_v9 }
  0xea   :  { %v216_v13 = vadd.f32 %v212_v7, %v101_v52  ;;  %v215_v14 = vadd.f32 %v211_v8, %v99_v53 }
  0xeb   :  { %v206_v15 = vpop.permute.xlu1 %205  ;;  %v204_v16 = vpop.permute.xlu0 %203 }
  0xec   :  { %v214_v17 = vadd.f32 %v206_v15, %v898_v12  ;;  %v213_v18 = vadd.f32 %v204_v16, %v892_v11  ;;  %225 = vrot.lane.b32.xlu1 %v216_v13, %s809_s0  ;;  %223 = vrot.lane.b32.xlu0 %v215_v14, %s809_s0 }
  0xee   :  { %v218_v19 = vadd.f32 %v214_v17, %v105_v62  ;;  %v217_v20 = vadd.f32 %v213_v18, %v103_v63 }
  0xef   :  { %v137_v26 = vpop.permute.xlu1 %136 }
  0xf0   :  { %229 = vrot.lane.b32.xlu1 %v218_v19, %s809_s0  ;;  %227 = vrot.lane.b32.xlu0 %v217_v20, %s809_s0 }
 0x136   :  { %v967_v9 = vpop.f32.mrb[0].mxu0 }
 0x137   :  { %v969_v10 = vpop.f32.mrb[1].mxu0 }
 0x13a   :  { %v971_v21 = vpop.f32.mrb[2].mxu0 }
 0x13b   :  { %v973_v12 = vpop.f32.mrb[3].mxu0 }
 0x13e   :  { %v975_v11 = vpop.f32.mrb[4].mxu0 }
 0x13f   :  { %v977_v22 = vpop.f32.mrb[5].mxu0 }
 0x142   :  { %v979_v23 = vpop.f32.mrb[6].mxu0 }
 0x143   :  { %v981_v24 = vpop.f32.mrb[7].mxu0 }
 0x150   :  { %v121_v27 = vpop.permute.xlu1 %120  ;;  %v119_v28 = vpop.permute.xlu0 %118 }
 0x151   :  { %132 = vst.msk [vmem:[#allocation4 + $0x8] sm:$0xff] %vm130_vm5, %v121_v27  ;;  %131 = vst.msk [vmem:[#allocation4] sm:$0xff] %vm130_vm5, %v119_v28 }
 0x152   :  { %140 = vst.msk [vmem:[#allocation4] sm:$0xf] %vm139_vm6, %v137_v26 }
 0x153   :  { %143 = vst.msk [vmem:[#allocation4] sm:$0xf] %vm142_vm7, %v141_v29 }
 0x154   :  { %v240_v30 = vpop.permute.xlu0 %239 }
 0x155   :  { %242 = vst.msk [vmem:[#allocation4 + $0x4] sm:$0xf] %vm139_vm6, %v240_v30 }
 0x156   :  { %244 = vst.msk [vmem:[#allocation4 + $0x4] sm:$0xf] %vm142_vm7, %v243_v31 }
 0x158   :  { %v125_v32 = vpop.permute.xlu1 %124  ;;  %v123_v33 = vpop.permute.xlu0 %122  ;;  %v256_v34 = vld [vmem:[#allocation4 + $0x8] sm:$0xff] }
 0x159   :  { %134 = vst.msk [vmem:[#allocation4 + $0x18] sm:$0xff] %vm130_vm5, %v125_v32  ;;  %133 = vst.msk [vmem:[#allocation4 + $0x10] sm:$0xff] %vm130_vm5, %v123_v33  ;;  %270 = vperm.xlu1 %711, %v256_v34  }
 0x15d   :  { %v255_v35 = vld [vmem:[#allocation4] sm:$0xff] }
 0x15e   :  { %v226_v36 = vpop.permute.xlu1 %225  ;;  %265 = vperm.xlu0 %712, %v255_v35   ;;  %v224_v37 = vpop.permute.xlu0 %223 }
 0x15f   :  { %236 = vst.msk [vmem:[#allocation4 + $0x28] sm:$0xff] %vm130_vm5, %v226_v36  ;;  %235 = vst.msk [vmem:[#allocation4 + $0x20] sm:$0xff] %vm130_vm5, %v224_v37 }
 0x160   :  { %v257_v38 = vld [vmem:[#allocation4 + $0x10] sm:$0xff]  ;;  %v258_v39 = vld [vmem:[#allocation4 + $0x18] sm:$0xff] }
 0x161   :  { %275 = vperm.xlu1 %711, %v257_v38  }
 0x162   :  { %v230_v40 = vpop.permute.xlu1 %229  ;;  %280 = vperm.xlu0 %712, %v258_v39   ;;  %v228_v41 = vpop.permute.xlu0 %227 }
 0x163   :  { %238 = vst.msk [vmem:[#allocation4 + $0x38] sm:$0xff] %vm130_vm5, %v230_v40  ;;  %237 = vst.msk [vmem:[#allocation4 + $0x30] sm:$0xff] %vm130_vm5, %v228_v41 }
 0x166   :  { %v260_v42 = vld [vmem:[#allocation4 + $0x28] sm:$0xff]  ;;  %v259_v43 = vld [vmem:[#allocation4 + $0x20] sm:$0xff] }
 0x167   :  { %290 = vperm.xlu0 %712, %v260_v42   ;;  %285 = vperm.xlu1 %711, %v259_v43  }
 0x16a   :  { %v262_v44 = vld [vmem:[#allocation4 + $0x38] sm:$0xff]  ;;  %v261_v45 = vld [vmem:[#allocation4 + $0x30] sm:$0xff] }
 0x16b   :  { %300 = vperm.xlu0 %712, %v262_v44   ;;  %295 = vperm.xlu1 %711, %v261_v45  }
 0x16f   :  { %713 = vset.pattern.permute.xlu0 %v810_v46  ;;  %185 = vrot.lane.b32.xlu1 %v915_v25, %s811_s21 }
 0x170   :  { %630 = vperm.xlu0 %713, %v255_v35   ;;  %714 = vset.pattern.permute.xlu1 %v812_v47 }
 0x173   :  { %638 = vperm.xlu1 %714, %v255_v35  }
 0x174   :  { %715 = vset.pattern.permute.xlu0 %v812_v47 }
 0x1ab   :  { %v417_v48 = vpop.f32.mrb[8].mxu0 }
 0x1ac   :  { %v419_v49 = vpop.f32.mrb[9].mxu0 }
 0x1af   :  { %v423_v50 = vpop.f32.mrb[10].mxu0 }
 0x1b0   :  { %v425_v51 = vpop.f32.mrb[11].mxu0 }
 0x1b3   :  { %v429_v52 = vpop.f32.mrb[12].mxu0 }
 0x1b4   :  { %v431_v53 = vpop.f32.mrb[13].mxu0 }
 0x1b7   :  { %v994_v54 = vpop.f32.mrb[14].mxu0 }
 0x1b8   :  { %v996_v55 = vpop.f32.mrb[15].mxu0 }
 0x1d8   :  { %v271_v56 = vpop.permute.xlu1 %270 }
 0x1d9   :  { %v999_v57 = vadd.f32 %v971_v21, %v271_v56  ;;  %v1002_v25 = vadd.f32 %v973_v12, %v271_v56 }
 0x1db   :  { %v661_v58 = vmul.f32 -1.442695, %v999_v57  ;;  %v662_v59 = vmul.f32 -1.442695, %v1002_v25 }
 0x1dd   :  { %724 = vpow2.f32 %v661_v58  ;;  %v266_v60 = vpop.permute.xlu0 %265 }
 0x1de   :  { %726 = vpow2.f32 %v662_v59  ;;  %v1007_v61 = vadd.f32 %v967_v9, %v266_v60  ;;  %v1010_v62 = vadd.f32 %v969_v10, %v266_v60 }
 0x1e0   :  { %v659_v63 = vmul.f32 -1.442695, %v1007_v61  ;;  %v660_v3 = vmul.f32 -1.442695, %v1010_v62  ;;  %v276_v4 = vpop.permute.xlu1 %275 }
 0x1e1   :  { %v1015_v5 = vadd.f32 %v975_v11, %v276_v4  ;;  %v1018_v6 = vadd.f32 %v977_v22, %v276_v4  ;;  %v281_v0 = vpop.permute.xlu0 %280 }
 0x1e2   :  { %728 = vpow2.f32 %v659_v63  ;;  %v1021_v7 = vadd.f32 %v979_v23, %v281_v0  ;;  %v1024_v8 = vadd.f32 %v981_v24, %v281_v0 }
 0x1e3   :  { %730 = vpow2.f32 %v660_v3  ;;  %v663_v13 = vmul.f32 -1.442695, %v1015_v5  ;;  %v664_v14 = vmul.f32 -1.442695, %v1018_v6 }
 0x1e4   :  { %v665_v15 = vmul.f32 -1.442695, %v1021_v7  ;;  %v666_v16 = vmul.f32 -1.442695, %v1024_v8 }
 0x1e5   :  { %732 = vpow2.f32 %v663_v13 }
 0x1e6   :  { %734 = vpow2.f32 %v664_v14  ;;  %v286_v17 = vpop.permute.xlu1 %285  ;;  %v291_v18 = vpop.permute.xlu0 %290 }
 0x1e7   :  { %v725_v19 = vpop.eup %724  ;;  %736 = vpow2.f32 %v665_v15  ;;  %v1030_v20 = vadd.f32 %v417_v48, %v286_v17  ;;  %v1032_v9 = vadd.f32 %v419_v49, %v286_v17  ;;  %v1034_v10 = vadd.f32 %v423_v50, %v291_v18 }
 0x1e8   :  { %v727_v21 = vpop.eup %726  ;;  %v490_v12 = vadd.f32 1.0, %v725_v19  ;;  %738 = vpow2.f32 %v666_v16  ;;  %v1038_v24 = vadd.f32 %v425_v51, %v291_v18 }
 0x1e9   :  { %v491_v11 = vadd.f32 1.0, %v727_v21  ;;  %v667_v22 = vmul.f32 -1.442695, %v1030_v20  ;;  %v668_v23 = vmul.f32 -1.442695, %v1032_v9 }
 0x1ea   :  { %740 = vrcp.f32 %v490_v12  ;;  %v669_v26 = vmul.f32 -1.442695, %v1034_v10  ;;  %v296_v27 = vpop.permute.xlu1 %295  ;;  %v670_v31 = vmul.f32 -1.442695, %v1038_v24  ;;  %v301_v32 = vpop.permute.xlu0 %300 }
 0x1eb   :  { %742 = vrcp.f32 %v491_v11  ;;  %v1042_v34 = vadd.f32 %v429_v52, %v296_v27  ;;  %v1044_v37 = vadd.f32 %v431_v53, %v296_v27  ;;  %v1047_v40 = vadd.f32 %v994_v54, %v301_v32 }
 0x1ec   :  { %v729_v28 = vpop.eup %728  ;;  %744 = vpow2.f32 %v667_v22  ;;  %v1052_v49 = vadd.f32 %v996_v55, %v301_v32 }
 0x1ed   :  { %v731_v29 = vpop.eup %730  ;;  %v488_v30 = vadd.f32 1.0, %v729_v28  ;;  %746 = vpow2.f32 %v668_v23  ;;  %v671_v45 = vmul.f32 -1.442695, %v1042_v34  ;;  %v672_v47 = vmul.f32 -1.442695, %v1044_v37 }
 0x1ee   :  { %v489_v33 = vadd.f32 1.0, %v731_v29  ;;  %748 = vpow2.f32 %v669_v26  ;;  %v186_v35 = vpop.permute.xlu1 %185  ;;  %v673_v50 = vmul.f32 -1.442695, %v1047_v40  ;;  %v674_v59 = vmul.f32 -1.442695, %v1052_v49 }
 0x1ef   :  { %v733_v36 = vpop.eup %732  ;;  %750 = vrcp.f32 %v488_v30  ;;  %189 = vst.msk [vmem:[#allocation3 + $0x4] sm:$0xf] %vm188_vm8, %v186_v35 }
 0x1f0   :  { %v735_v38 = vpop.eup %734  ;;  %752 = vrcp.f32 %v489_v33  ;;  %v492_v39 = vadd.f32 1.0, %v733_v36 }
 0x1f1   :  { %v737_v41 = vpop.eup %736  ;;  %v493_v42 = vadd.f32 1.0, %v735_v38  ;;  %754 = vpow2.f32 %v670_v31 }
 0x1f2   :  { %v739_v43 = vpop.eup %738  ;;  %756 = vrcp.f32 %v492_v39  ;;  %v494_v44 = vadd.f32 1.0, %v737_v41 }
 0x1f3   :  { %758 = vrcp.f32 %v493_v42  ;;  %v495_v46 = vadd.f32 1.0, %v739_v43 }
 0x1f4   :  { %v741_v48 = vpop.eup %740  ;;  %760 = vrcp.f32 %v494_v44 }
 0x1f5   :  { %v743_v51 = vpop.eup %742  ;;  %762 = vrcp.f32 %v495_v46  ;;  %v538_v4 = vmul.f32 %v741_v48, %v999_v57 }
 0x1f6   :  { %v745_v52 = vpop.eup %744  ;;  %764 = vpow2.f32 %v671_v45  ;;  %v539_v14 = vmul.f32 %v743_v51, %v1002_v25 }
 0x1f7   :  { %v747_v53 = vpop.eup %746  ;;  %v496_v54 = vadd.f32 1.0, %v745_v52  ;;  %766 = vpow2.f32 %v672_v47 }
 0x1f8   :  { %v749_v56 = vpop.eup %748  ;;  %v497_v58 = vadd.f32 1.0, %v747_v53  ;;  %768 = vpow2.f32 %v673_v50  ;;  %v631_v50 = vpop.permute.xlu0 %630 }
 0x1f9   :  { %v751_v60 = vpop.eup %750  ;;  %770 = vrcp.f32 %v496_v54  ;;  %v498_v63 = vadd.f32 1.0, %v749_v56  ;;  %v633_v51 = vmul.f32 %v631_v50, %v864_v2  ;;  %v639_v54 = vpop.permute.xlu1 %638 }
 0x1fa   :  { %v753_v3 = vpop.eup %752  ;;  %772 = vrcp.f32 %v497_v58  ;;  %v536_v55 = vmul.f32 %v751_v60, %v1007_v61 }
 0x1fb   :  { %v755_v0 = vpop.eup %754  ;;  %774 = vrcp.f32 %v498_v63  ;;  %v537_v13 = vmul.f32 %v753_v3, %v1010_v62 }
 0x1fc   :  { %v757_v15 = vpop.eup %756  ;;  %v499_v16 = vadd.f32 1.0, %v755_v0  ;;  %776 = vpow2.f32 %v674_v59  ;;  %v678_v17 = vpack.c.bf16 %v538_v4, %v536_v55 }
 0x1fd   :  { %v759_v18 = vpop.eup %758  ;;  %v540_v19 = vmul.f32 %v757_v15, %v1015_v5  ;;  %v676_v21 = vpack.c.bf16 %v539_v14, %v537_v13 }
 0x1fe   :  { %v761_v12 = vpop.eup %760  ;;  %v541_v11 = vmul.f32 %v759_v18, %v1018_v6  ;;  %778 = vrcp.f32 %v499_v16 }
 0x1ff   :  { %v763_v61 = vpop.eup %762  ;;  %v542_v57 = vmul.f32 %v761_v12, %v1021_v7  ;;  %677 = vmatprep.subr.bf16.mxu1 %v676_v21 }
 0x200   :  { %v765_v22 = vpop.eup %764  ;;  %v543_v62 = vmul.f32 %v763_v61, %v1024_v8  ;;  %679 = vmatpush1.bf16.msra.mxu1 %v678_v17 }
 0x201   :  { %v767_v25 = vpop.eup %766  ;;  %v500_v23 = vadd.f32 1.0, %v765_v22  ;;  %v682_v26 = vpack.c.bf16 %v542_v57, %v540_v19 }
 0x202   :  { %v769_v27 = vpop.eup %768  ;;  %v501_v28 = vadd.f32 1.0, %v767_v25  ;;  %v680_v29 = vpack.c.bf16 %v543_v62, %v541_v11 }
 0x203   :  { %v771_v5 = vpop.eup %770  ;;  %780 = vrcp.f32 %v500_v23  ;;  %v502_v30 = vadd.f32 1.0, %v769_v27 }
 0x204   :  { %v773_v31 = vpop.eup %772  ;;  %v544_v6 = vmul.f32 %v771_v5, %v1030_v20  ;;  %782 = vrcp.f32 %v501_v28  ;;  %681 = vmatprep.subr.bf16.mxu1 %v680_v29 }
 0x205   :  { %v775_v7 = vpop.eup %774  ;;  %784 = vrcp.f32 %v502_v30  ;;  %683 = vmatpush1.bf16.msra.mxu1 %v682_v26  ;;  %v545_v33 = vmul.f32 %v773_v31, %v1032_v9 }
 0x206   :  { %v777_v32 = vpop.eup %776  ;;  %v546_v8 = vmul.f32 %v775_v7, %v1034_v10 }
 0x207   :  { %v503_v35 = vadd.f32 1.0, %v777_v32 }
 0x208   :  { %v779_v36 = vpop.eup %778  ;;  %v686_v38 = vpack.c.bf16 %v546_v8, %v544_v6 }
 0x209   :  { %v547_v39 = vmul.f32 %v779_v36, %v1038_v24  ;;  %786 = vrcp.f32 %v503_v35  ;;  %v552_v24 = vld [vmem:[#allocation3] sm:$0xff] }
 0x20b   :  { %v684_v41 = vpack.c.bf16 %v547_v39, %v545_v33 }
 0x20d   :  { %v781_v42 = vpop.eup %780  ;;  %685 = vmatprep.subr.bf16.mxu1 %v684_v41 }
 0x20e   :  { %v783_v20 = vpop.eup %782  ;;  %v548_v43 = vmul.f32 %v781_v42, %v1042_v34  ;;  %687 = vmatpush1.bf16.msra.mxu1 %v686_v38  ;;  %v634_v34 = vmul.f32 %v631_v50, %v859_v1 }
 0x20f   :  { %v785_v44 = vpop.eup %784  ;;  %v549_v10 = vmul.f32 %v783_v20, %v1044_v37 }
 0x210   :  { %v550_v45 = vmul.f32 %v785_v44, %v1047_v40 }
 0x212   :  { %v690_v46 = vpack.c.bf16 %v550_v45, %v548_v43 }
 0x213   :  { %v787_v9 = vpop.eup %786 }
 0x214   :  { %v551_v47 = vmul.f32 %v787_v9, %v1052_v49 }
 0x216   :  { %v688_v48 = vpack.c.bf16 %v551_v47, %v549_v10 }
 0x218   :  { %689 = vmatprep.subr.bf16.mxu1 %v688_v48 }
 0x219   :  { %691 = vmatpush1.bf16.msra.mxu1 %v690_v46 }
 0x21c   :  { %675 = vmatmul.mubr.msk.f32.vlgmr.msra.gmra.mrb[0].mxu1 %vm41_vm1, %v552_v24 }
 0x2ef   :  { %v622_v52 = vpop.f32.mrb[0].mxu1 }
 0x2f0   :  { %v635_v53 = vadd.f32 %v633_v51, %v622_v52  ;;  %v624_v40 = vpop.f32.mrb[1].mxu1 }
 0x2f1   :  { %v636_v37 = vadd.f32 %v634_v34, %v624_v40 }
 0x2f2   :  { %v641_v56 = vadd.f32 %v639_v54, %v635_v53 }
 0x2f3   :  { %v642_v58 = vadd.f32 %v639_v54, %v636_v37 }
 0x2f4   :  { %643 = vst [vmem:[%s1084_s3] sm:$0xff] %v641_v56 }
 0x2f5   :  { %644 = vst [vmem:[%s1084_s3 + $0x8] sm:$0xff] %v642_v58 }
 0x2f6   :  { %649 = vsyncpa [#allocation6], 1 }

</bundles_post_ra>
